<compile_context>
chip_gen: v7x
topology: tpu7x:2x2x1
jax: 0.10.0
libtpu: 0.0.40
codegen_flags: <defaults>
</compile_context>

<pallas_src>
import jax
import jax.numpy as jnp
from jax.experimental import pallas as pl
from jax.experimental.pallas import tpu as pltpu


# --------------------------------------------------------------------------
# Chip-generation defaults (TensorCores per chip, physical VMEM per TC).
# --------------------------------------------------------------------------
def _chip_defaults():
    num_tc = 1
    vmem_phys = 64 * 1024 * 1024          # conservative fallback (v7x per-TC)
    try:
        kind = jax.devices()[0].device_kind.lower()
        if "v7" in kind:
            num_tc, vmem_phys = 2, 64 * 1024 * 1024
        elif "v6" in kind or "v5" in kind or "v4" in kind:
            num_tc, vmem_phys = 1, 128 * 1024 * 1024
    except Exception:
        pass
    return num_tc, vmem_phys


def _choose_tile_b(B, num_tc, max_rows):
    """Largest batch tile that (a) divides B, (b) is a multiple of 8 sublanes,
    (c) is <= max_rows; prefer a grid length that is a multiple of num_tc so
    megacore sharding keeps both v7x TensorCores busy."""
    if B % 8 != 0:
        return B                      # block == full array dim -> always legal
    cands = [d for d in range(8, min(B, max_rows) + 1, 8) if B % d == 0]
    if not cands:
        return B
    even = [d for d in cands if (B // d) % num_tc == 0]
    pool = even if even else cands
    return max(pool)


# --------------------------------------------------------------------------
# Kernel: one fused Euler step on a (tile_b, D) batch tile.
# --------------------------------------------------------------------------
def _euler_step_kernel(x_ref, w1_ref, b1_ref, w2_ref, b2_ref, o_ref):
    # f(x) = tanh(x @ W1 + b1) @ (dt*W2) + dt*b2   (dt pre-folded in wrapper)
    xb = x_ref[...].astype(jnp.bfloat16)                       # bf16 MXU operand
    h = jnp.tanh(
        jnp.dot(xb, w1_ref[...], preferred_element_type=jnp.float32) + b1_ref[...]
    )
    f = (
        jnp.dot(h.astype(jnp.bfloat16), w2_ref[...],
                preferred_element_type=jnp.float32)
        + b2_ref[...]
    )
    # Re-read x for the residual (short live range; VMEM reloads are cheap).
    o_ref[...] = (x_ref[...].astype(jnp.float32) + f).astype(o_ref.dtype)


# --------------------------------------------------------------------------
# One-time weight preparation (cache and reuse across Euler time steps).
# --------------------------------------------------------------------------
def prepare_euler_weights(w1, b1, w2, b2, dt):
    # Note: folding dt into W2/b2 before the bf16 cast changes rounding vs.
    # computing dt*(h@W2) in f32; fine for moderate dt (matches the bf16
    # reference below), document if dt is extreme.
    dt_f = jnp.float32(dt)
    return (
        w1.astype(jnp.bfloat16),                                # (D, H) bf16
        b1.astype(jnp.float32).reshape(1, -1),                  # (1, H) f32
        (w2.astype(jnp.float32) * dt_f).astype(jnp.bfloat16),   # (H, D) bf16
        (b2.astype(jnp.float32) * dt_f).reshape(1, -1),         # (1, D) f32
    )


def forward_euler_step(x, prepared, *, max_tile_rows=1024):
    """out = x + dt * (tanh(x @ w1 + b1) @ w2 + b2), fully fused in one kernel."""
    w1b, b1f, w2b, b2f = prepared
    B, D = x.shape
    H = w1b.shape[1]
    assert w1b.shape == (D, H) and w2b.shape == (H, D)
    assert b1f.shape == (1, H) and b2f.shape == (1, D)

    num_tc, vmem_phys = _chip_defaults()
    tile_b = _choose_tile_b(B, num_tc, max_tile_rows)
    grid = (B // tile_b if B % tile_b == 0 else 1,)
    if grid[0] == 1:
        tile_b = B

    # ---- honest VMEM budget: double-buffered x/out tiles, single-counted
    #      resident weights/biases, in-kernel f32 temporaries, fixed headroom.
    x_item = jnp.dtype(x.dtype).itemsize
    est = (
        2 * 2 * tile_b * D * x_item            # x + out tiles, 2x buffered
        + D * H * 2 + H * D * 2                # resident bf16 weights
        + H * 4 + D * 4                        # biases (f32)
        + tile_b * H * 4 + tile_b * D * 4      # h / f f32 temporaries
        + 4 * 1024 * 1024                      # compiler-internal headroom
    )
    vmem_limit = int(min(max(est, 16 * 1024 * 1024), int(vmem_phys * 0.75)))

    out = pl.pallas_call(
        _euler_step_kernel,
        out_shape=jax.ShapeDtypeStruct((B, D), x.dtype),
        grid=grid,
        in_specs=[
            pl.BlockSpec((tile_b, D), lambda i: (i, 0)),   # x tile (pipelined)
            pl.BlockSpec((D, H), lambda i: (0, 0)),        # W1       (resident)
            pl.BlockSpec((1, H), lambda i: (0, 0)),        # b1       (resident)
            pl.BlockSpec((H, D), lambda i: (0, 0)),        # dt*W2    (resident)
            pl.BlockSpec((1, D), lambda i: (0, 0)),        # dt*b2    (resident)
        ],
        out_specs=pl.BlockSpec((tile_b, D), lambda i: (i, 0)),
        compiler_params=pltpu.CompilerParams(
            dimension_semantics=("parallel",),
            vmem_limit_bytes=vmem_limit,
        ),
    )(x, w1b, b1f, w2b, b2f)
    return out


# --------------------------------------------------------------------------
# References.
# --------------------------------------------------------------------------
def reference_f32(x, w1, b1, w2, b2, dt):
    h = jnp.tanh(x @ w1 + b1[None, :])
    f = h @ w2 + b2[None, :]
    return x + dt * f


def reference_bf16(x, w1, b1, w2, b2, dt):
    # Emulates the kernel's bf16-operand / f32-accumulate matmuls exactly.
    dt_f = jnp.float32(dt)
    xb = x.astype(jnp.bfloat16)
    w1b = w1.astype(jnp.bfloat16)
    w2b = (w2.astype(jnp.float32) * dt_f).astype(jnp.bfloat16)
    h = jnp.tanh(jnp.dot(xb, w1b, preferred_element_type=jnp.float32) + b1[None, :])
    f = jnp.dot(h.astype(jnp.bfloat16), w2b,
                preferred_element_type=jnp.float32) + (b2 * dt_f)[None, :]
    return x + f


if __name__ == "__main__":
    key = jax.random.PRNGKey(0)
    k_x, k_w1, k_b1, k_w2, k_b2 = jax.random.split(key, 5)

    # Model space: (B, D) with hidden width H.  No padding of D/H (they are
    # used as full-array block dims); tile_b is picked per-chip-generation.
    B, D, H = 512, 32, 64
    dt = 1.0                      # dt_tensor=1 (module default)

    x = jax.random.normal(k_x, (B, D), dtype=jnp.float32)
    w1 = jax.random.normal(k_w1, (D, H), dtype=jnp.float32) * 0.1
    b1 = jax.random.normal(k_b1, (H,), dtype=jnp.float32) * 0.1
    w2 = jax.random.normal(k_w2, (H, D), dtype=jnp.float32) * 0.1
    b2 = jax.random.normal(k_b2, (D,), dtype=jnp.float32) * 0.1

    # Weights prepared once, reused for every Euler step (only x changes).
    prepared = prepare_euler_weights(w1, b1, w2, b2, dt)

    out = forward_euler_step(x, prepared)
    out = jax.block_until_ready(out)
    assert out.shape == (B, D)

    # Tight check against a bf16-operand emulation of the kernel math.
    ref_bf16 = reference_bf16(x, w1, b1, w2, b2, dt)
    assert jnp.allclose(out, ref_bf16, atol=2e-3, rtol=2e-3), "mismatch vs bf16 reference"

    # Loose check against the full-f32 PyTorch-equivalent reference.
    ref_f32 = reference_f32(x, w1, b1, w2, b2, dt)
    assert jnp.allclose(out, ref_f32, atol=3e-2, rtol=3e-2), "mismatch vs f32 reference"

    print("KERNEL_OK")
</pallas_src>

<mosaic_0001>
module attributes {stable_mosaic.version = 11 : i64} {
  func.func @_euler_step_kernel(%arg0: i32, %arg1: memref<512x32xf32, #tpu.memory_space<vmem>>, %arg2: memref<32x64xbf16, #tpu.memory_space<vmem>>, %arg3: memref<1x64xf32, #tpu.memory_space<vmem>>, %arg4: memref<64x32xbf16, #tpu.memory_space<vmem>>, %arg5: memref<1x32xf32, #tpu.memory_space<vmem>>, %arg6: memref<512x32xf32, #tpu.memory_space<vmem>>) attributes {dimension_semantics = [#tpu.dimension_semantics<parallel>], iteration_bounds = array<i64: 1>, scalar_prefetch = 0 : i64, scratch_operands = 0 : i64, tpu.core_type = #tpu.core_type<tc>, window_params = [{transform_indices = @transform_0, window_bounds = array<i64: 512, 32>}, {pipeline_mode = #tpu.pipeline_mode<synchronous>, transform_indices = @transform_1, window_bounds = array<i64: 32, 64>}, {pipeline_mode = #tpu.pipeline_mode<synchronous>, transform_indices = @transform_2, window_bounds = array<i64: 1, 64>}, {pipeline_mode = #tpu.pipeline_mode<synchronous>, transform_indices = @transform_3, window_bounds = array<i64: 64, 32>}, {pipeline_mode = #tpu.pipeline_mode<synchronous>, transform_indices = @transform_4, window_bounds = array<i64: 1, 32>}, {transform_indices = @transform_5, window_bounds = array<i64: 512, 32>}]} {
    %c0 = arith.constant 0 : index
    %c0_0 = arith.constant 0 : index
    %0 = vector.load %arg1[%c0, %c0_0] : memref<512x32xf32, #tpu.memory_space<vmem>>, vector<512x32xf32>
    %1 = arith.truncf %0 : vector<512x32xf32> to vector<512x32xbf16>
    %c0_1 = arith.constant 0 : index
    %c0_2 = arith.constant 0 : index
    %2 = vector.load %arg2[%c0_1, %c0_2] : memref<32x64xbf16, #tpu.memory_space<vmem>>, vector<32x64xbf16>
    %cst = arith.constant dense<0.000000e+00> : vector<512x64xf32>
    %3 = tpu.matmul %1, %2, %cst {dimension_numbers = #tpu.dot_dimension_numbers<[1], [0], [0], [1], [0, 0, 1, 1], [], []>} : vector<512x32xbf16>, vector<32x64xbf16>, vector<512x64xf32> -> vector<512x64xf32>
    %c0_3 = arith.constant 0 : index
    %c0_4 = arith.constant 0 : index
    %4 = vector.load %arg3[%c0_3, %c0_4] : memref<1x64xf32, #tpu.memory_space<vmem>>, vector<1x64xf32>
    %5 = vector.broadcast %4 : vector<1x64xf32> to vector<512x64xf32>
    %6 = arith.addf %3, %5 : vector<512x64xf32>
    %7 = math.tanh %6 : vector<512x64xf32>
    %8 = arith.truncf %7 : vector<512x64xf32> to vector<512x64xbf16>
    %c0_5 = arith.constant 0 : index
    %c0_6 = arith.constant 0 : index
    %9 = vector.load %arg4[%c0_5, %c0_6] : memref<64x32xbf16, #tpu.memory_space<vmem>>, vector<64x32xbf16>
    %cst_7 = arith.constant dense<0.000000e+00> : vector<512x32xf32>
    %10 = tpu.matmul %8, %9, %cst_7 {dimension_numbers = #tpu.dot_dimension_numbers<[1], [0], [0], [1], [0, 0, 1, 1], [], []>} : vector<512x64xbf16>, vector<64x32xbf16>, vector<512x32xf32> -> vector<512x32xf32>
    %c0_8 = arith.constant 0 : index
    %c0_9 = arith.constant 0 : index
    %11 = vector.load %arg5[%c0_8, %c0_9] : memref<1x32xf32, #tpu.memory_space<vmem>>, vector<1x32xf32>
    %12 = vector.broadcast %11 : vector<1x32xf32> to vector<512x32xf32>
    %13 = arith.addf %10, %12 : vector<512x32xf32>
    %c0_10 = arith.constant 0 : index
    %c0_11 = arith.constant 0 : index
    %14 = vector.load %arg1[%c0_10, %c0_11] : memref<512x32xf32, #tpu.memory_space<vmem>>, vector<512x32xf32>
    %15 = arith.addf %14, %13 : vector<512x32xf32>
    %c0_12 = arith.constant 0 : index
    %c0_13 = arith.constant 0 : index
    %16 = vector.load %arg6[%c0_12, %c0_13] : memref<512x32xf32, #tpu.memory_space<vmem>>, vector<512x32xf32>
    tpu.vector_store %arg6[%c0_12, %c0_13], %15 {strides = array<i32>} : memref<512x32xf32, #tpu.memory_space<vmem>>, vector<512x32xf32>,
    return
  }
  func.func @transform_0(%arg0: i32) -> (i32, i32) {
    %c0_i32 = arith.constant 0 : i32
    %c0_i32_0 = arith.constant 0 : i32
    return %arg0, %c0_i32 : i32, i32
  }
  func.func @transform_1(%arg0: i32) -> (i32, i32) {
    %c0_i32 = arith.constant 0 : i32
    %c0_i32_0 = arith.constant 0 : i32
    %c0_i32_1 = arith.constant 0 : i32
    return %c0_i32, %c0_i32_0 : i32, i32
  }
  func.func @transform_2(%arg0: i32) -> (i32, i32) {
    %c0_i32 = arith.constant 0 : i32
    %c0_i32_0 = arith.constant 0 : i32
    %c0_i32_1 = arith.constant 0 : i32
    return %c0_i32, %c0_i32_0 : i32, i32
  }
  func.func @transform_3(%arg0: i32) -> (i32, i32) {
    %c0_i32 = arith.constant 0 : i32
    %c0_i32_0 = arith.constant 0 : i32
    %c0_i32_1 = arith.constant 0 : i32
    return %c0_i32, %c0_i32_0 : i32, i32
  }
  func.func @transform_4(%arg0: i32) -> (i32, i32) {
    %c0_i32 = arith.constant 0 : i32
    %c0_i32_0 = arith.constant 0 : i32
    %c0_i32_1 = arith.constant 0 : i32
    return %c0_i32, %c0_i32_0 : i32, i32
  }
  func.func @transform_5(%arg0: i32) -> (i32, i32) {
    %c0_i32 = arith.constant 0 : i32
    %c0_i32_0 = arith.constant 0 : i32
    return %arg0, %c0_i32 : i32, i32
  }
}

</mosaic_0001>

<bundles_post_ra>
// kernel: tpu_custom_call.1
= control target key start
LH: loop header
LB: loop body
LE: loop exit
PB: predicated region body
PF: predicated region fallthrough
CT: control target
= control target key end

     0   :  { %vm140_vm0 = vcmask 261120   ;;  %vm661_vm1 = vcmask 523264   ;;  %s2549_s1 = inlined_call_operand.vmem [shape: bf16[32,64], index: 1, kind: input, shape index: {}]   ;;  %s2550_s0 = inlined_call_operand.vmem [shape: f32[512,32], index: 0, kind: input, shape index: {}]   ;;  %s2551_s3 = inlined_call_operand.vmem [shape: bf16[64,32], index: 3, kind: input, shape index: {}]   ;;  %s2552_s2 = inlined_call_operand.vmem [shape: f32[1,64], index: 2, kind: input, shape index: {}]   ;;  %s2553_s4 = inlined_call_operand.vmem [shape: f32[1,32], index: 4, kind: input, shape index: {}]   ;;  %s2554_s5 = inlined_call_operand.vmem [shape: f32[512,32], index: 5, kind: output, shape index: {}]  }
   0x1   :  { %v1461_v0 = vld [vmem:[%s2549_s1] sm:$0xff]   ;;  %v1462_v1 = vld [vmem:[%s2549_s1 + $0x8] sm:$0xff]   ;;  %v1694_v5 = vld [vmem:[%s2550_s0 + $0x10] sm:$0xff] }
   0x2   :  { %1321 = vmatprep.subr.bf16.mxu0 %v1461_v0  ;;  %v1682_v2 = vld [vmem:[%s2550_s0] sm:$0xff]  ;;  %v1687_v3 = vld [vmem:[%s2550_s0 + $0x8] sm:$0xff]  ;;  %v1699_v6 = vld [vmem:[%s2550_s0 + $0x18] sm:$0xff] }
   0x3   :  { %1322 = vmatpush3.bf16.msra.mxu0 %v1461_v0  ;;  %v85_v4 = vpack.c.bf16 %v1687_v3, %v1682_v2  ;;  %v1704_v7 = vld [vmem:[%s2550_s0 + $0x20] sm:$0xff]  ;;  %v1709_v8 = vld [vmem:[%s2550_s0 + $0x28] sm:$0xff]  ;;  %v86_v9 = vpack.c.bf16 %v1699_v6, %v1694_v5  ;;  %v1721_v11 = vld [vmem:[%s2550_s0 + $0x30] sm:$0xff] }
   0x4   :  { %1323 = vmatprep.subr.bf16.mxu0 %v1462_v1  ;;  %v87_v10 = vpack.c.bf16 %v1709_v8, %v1704_v7  ;;  %v1726_v12 = vld [vmem:[%s2550_s0 + $0x38] sm:$0xff]  ;;  %v1731_v13 = vld [vmem:[%s2550_s0 + $0x40] sm:$0xff]  ;;  %v1736_v14 = vld [vmem:[%s2550_s0 + $0x48] sm:$0xff] }
   0x5   :  { %1325 = vmatprep.mubr.msk.bf16.mxu0 %vm140_vm0, %v85_v4  ;;  %v88_v15 = vpack.c.bf16 %v1726_v12, %v1721_v11  ;;  %v89_v16 = vpack.c.bf16 %v1736_v14, %v1731_v13  ;;  %v1747_v17 = vld [vmem:[%s2550_s0 + $0x50] sm:$0xff]  ;;  %v1752_v18 = vld [vmem:[%s2550_s0 + $0x58] sm:$0xff]  ;;  %v1757_v19 = vld [vmem:[%s2550_s0 + $0x60] sm:$0xff] }
   0x6   :  { %v34_v20 = vld [vmem:[%s2550_s0 + $0x68] sm:$0xff]  ;;  %v90_v21 = vpack.c.bf16 %v1752_v18, %v1747_v17  ;;  %v1770_v23 = vld [vmem:[%s2550_s0 + $0x70] sm:$0xff]  ;;  %v1775_v24 = vld [vmem:[%s2550_s0 + $0x78] sm:$0xff] }
   0x7   :  { %1324 = vmatpush3.bf16.msra.mxu0 %v1462_v1  ;;  %v91_v22 = vpack.c.bf16 %v34_v20, %v1757_v19  ;;  %v37_v25 = vld [vmem:[%s2550_s0 + $0x80] sm:$0xff]  ;;  %v38_v26 = vld [vmem:[%s2550_s0 + $0x88] sm:$0xff]  ;;  %v92_v27 = vpack.c.bf16 %v1775_v24, %v1770_v23  ;;  %v1790_v29 = vld [vmem:[%s2550_s0 + $0x90] sm:$0xff] }
   0x8   :  { %v93_v28 = vpack.c.bf16 %v38_v26, %v37_v25  ;;  %v40_v30 = vld [vmem:[%s2550_s0 + $0x98] sm:$0xff]  ;;  %v41_v31 = vld [vmem:[%s2550_s0 + $0xa0] sm:$0xff]  ;;  %v42_v32 = vld [vmem:[%s2550_s0 + $0xa8] sm:$0xff] }
   0x9   :  { %v94_v33 = vpack.c.bf16 %v40_v30, %v1790_v29  ;;  %v95_v34 = vpack.c.bf16 %v42_v32, %v41_v31  ;;  %v43_v35 = vld [vmem:[%s2550_s0 + $0xb0] sm:$0xff]  ;;  %v44_v36 = vld [vmem:[%s2550_s0 + $0xb8] sm:$0xff]  ;;  %v45_v37 = vld [vmem:[%s2550_s0 + $0xc0] sm:$0xff] }
   0xa   :  { %1326 = vmatmul.mubr.msk.bf16.vlgmr.msra.gmra.mrb[0].mxu0 %vm140_vm0, %v86_v9  ;;  %v46_v38 = vld [vmem:[%s2550_s0 + $0xc8] sm:$0xff]  ;;  %v96_v39 = vpack.c.bf16 %v44_v36, %v43_v35  ;;  %v47_v41 = vld [vmem:[%s2550_s0 + $0xd0] sm:$0xff]  ;;  %v48_v42 = vld [vmem:[%s2550_s0 + $0xd8] sm:$0xff] }
   0xb   :  { %1329 = vmatprep.mubr.msk.bf16.mxu0 %vm140_vm0, %v87_v10  ;;  %v97_v40 = vpack.c.bf16 %v46_v38, %v45_v37  ;;  %v49_v43 = vld [vmem:[%s2550_s0 + $0xe0] sm:$0xff]  ;;  %v50_v44 = vld [vmem:[%s2550_s0 + $0xe8] sm:$0xff]  ;;  %v98_v45 = vpack.c.bf16 %v48_v42, %v47_v41  ;;  %v51_v47 = vld [vmem:[%s2550_s0 + $0xf0] sm:$0xff] }
   0xc   :  { %v99_v46 = vpack.c.bf16 %v50_v44, %v49_v43  ;;  %v52_v48 = vld [vmem:[%s2550_s0 + $0xf8] sm:$0xff]  ;;  %v53_v49 = vld [vmem:[%s2550_s0 + $0x100] sm:$0xff]  ;;  %v54_v50 = vld [vmem:[%s2550_s0 + $0x108] sm:$0xff] }
   0xd   :  { %v100_v51 = vpack.c.bf16 %v52_v48, %v51_v47  ;;  %v101_v52 = vpack.c.bf16 %v54_v50, %v53_v49  ;;  %v55_v53 = vld [vmem:[%s2550_s0 + $0x110] sm:$0xff]  ;;  %v56_v54 = vld [vmem:[%s2550_s0 + $0x118] sm:$0xff]  ;;  %v57_v55 = vld [vmem:[%s2550_s0 + $0x120] sm:$0xff] }
   0xe   :  { %v58_v56 = vld [vmem:[%s2550_s0 + $0x128] sm:$0xff]  ;;  %v102_v57 = vpack.c.bf16 %v56_v54, %v55_v53  ;;  %v59_v59 = vld [vmem:[%s2550_s0 + $0x130] sm:$0xff]  ;;  %v60_v60 = vld [vmem:[%s2550_s0 + $0x138] sm:$0xff] }
   0xf   :  { %v103_v58 = vpack.c.bf16 %v58_v56, %v57_v55  ;;  %v61_v61 = vld [vmem:[%s2550_s0 + $0x140] sm:$0xff]  ;;  %v62_v62 = vld [vmem:[%s2550_s0 + $0x148] sm:$0xff]  ;;  %v104_v63 = vpack.c.bf16 %v60_v60, %v59_v59  ;;  %v63_v1 = vld [vmem:[%s2550_s0 + $0x150] sm:$0xff] }
  0x10   :  { %v105_v0 = vpack.c.bf16 %v62_v62, %v61_v61  ;;  %v64_v4 = vld [vmem:[%s2550_s0 + $0x158] sm:$0xff]  ;;  %v65_v9 = vld [vmem:[%s2550_s0 + $0x160] sm:$0xff]  ;;  %v66_v10 = vld [vmem:[%s2550_s0 + $0x168] sm:$0xff] }
  0x11   :  { %v67_v20 = vld [vmem:[%s2550_s0 + $0x170] sm:$0xff]  ;;  %v70_v25 = vld [vmem:[%s2550_s0 + $0x188] sm:$0xff]  ;;  %v72_v31 = vld [vmem:[%s2550_s0 + $0x198] sm:$0xff] }
  0x12   :  { %1330 = vmatmul.mubr.msk.bf16.gmra.mrb[4].mxu0 %vm140_vm0, %v88_v15  ;;  %v106_v15 = vpack.c.bf16 %v64_v4, %v63_v1  ;;  %v71_v30 = vld [vmem:[%s2550_s0 + $0x190] sm:$0xff]  ;;  %v1464_v32 = vld [vmem:[%s2551_s3 + $0x8] sm:$0xff]   ;;  %v77_v41 = vld [vmem:[%s2550_s0 + $0x1c0] sm:$0xff] }
  0x13   :  { %1333 = vmatprep.mubr.msk.bf16.mxu0 %vm140_vm0, %v89_v16  ;;  %v107_v16 = vpack.c.bf16 %v66_v10, %v65_v9  ;;  %v110_v35 = vpack.c.bf16 %v72_v31, %v71_v30  ;;  %v1465_v37 = vld [vmem:[%s2551_s3 + $0x10] sm:$0xff]   ;;  %v78_v42 = vld [vmem:[%s2550_s0 + $0x1c8] sm:$0xff]  ;;  %v81_v47 = vld [vmem:[%s2550_s0 + $0x1e0] sm:$0xff] }
  0x14   :  { %v75_v38 = vld [vmem:[%s2550_s0 + $0x1b0] sm:$0xff]  ;;  %v113_v44 = vpack.c.bf16 %v78_v42, %v77_v41  ;;  %v82_v48 = vld [vmem:[%s2550_s0 + $0x1e8] sm:$0xff]  ;;  %v1966_v54 = vld [vmem:[%s2552_s2] ss:$0 sm:$0xff] }
  0x15   :  { %v115_v50 = vpack.c.bf16 %v82_v48, %v81_v47 }
  0x1a   :  { %1334 = vmatmul.mubr.msk.bf16.gmra.mrb[8].mxu0 %vm140_vm0, %v90_v21  ;;  %v68_v21 = vld [vmem:[%s2550_s0 + $0x178] sm:$0xff] }
  0x1b   :  { %1337 = vmatprep.mubr.msk.bf16.mxu0 %vm140_vm0, %v91_v22  ;;  %v69_v22 = vld [vmem:[%s2550_s0 + $0x180] sm:$0xff]  ;;  %v108_v26 = vpack.c.bf16 %v68_v21, %v67_v20 }
  0x22   :  { %1338 = vmatmul.mubr.msk.bf16.gmra.mrb[12].mxu0 %vm140_vm0, %v92_v27  ;;  %v109_v27 = vpack.c.bf16 %v70_v25, %v69_v22 }
  0x23   :  { %1341 = vmatprep.mubr.msk.bf16.mxu0 %vm140_vm0, %v93_v28  ;;  %v1463_v28 = vld [vmem:[%s2551_s3] sm:$0xff]  }
  0x24   :  { %1389 = vmatprep.subr.bf16.mxu1 %v1463_v28 }
  0x25   :  { %1390 = vmatpush3.bf16.msra.mxu1 %v1463_v28 }
  0x26   :  { %1391 = vmatprep.subr.bf16.mxu1 %v1464_v32 }
  0x29   :  { %1392 = vmatpush3.bf16.msra.mxu1 %v1464_v32 }
  0x2a   :  { %1342 = vmatmul.mubr.msk.bf16.gmra.mrb[16].mxu0 %vm140_vm0, %v94_v33  ;;  %v73_v33 = vld [vmem:[%s2550_s0 + $0x1a0] sm:$0xff]  ;;  %1393 = vmatprep.subr.bf16.mxu1 %v1465_v37 }
  0x2b   :  { %1345 = vmatprep.mubr.msk.bf16.mxu0 %vm140_vm0, %v95_v34  ;;  %v74_v34 = vld [vmem:[%s2550_s0 + $0x1a8] sm:$0xff] }
  0x2c   :  { %v111_v36 = vpack.c.bf16 %v74_v34, %v73_v33 }
  0x2d   :  { %1394 = vmatpush3.bf16.msra.mxu1 %v1465_v37 }
  0x32   :  { %1346 = vmatmul.mubr.msk.bf16.gmra.mrb[20].mxu0 %vm140_vm0, %v96_v39  ;;  %v76_v39 = vld [vmem:[%s2550_s0 + $0x1b8] sm:$0xff] }
  0x33   :  { %1349 = vmatprep.mubr.msk.bf16.mxu0 %vm140_vm0, %v97_v40  ;;  %v1466_v40 = vld [vmem:[%s2551_s3 + $0x18] sm:$0xff]   ;;  %v112_v43 = vpack.c.bf16 %v76_v39, %v75_v38 }
  0x34   :  { %1395 = vmatprep.subr.bf16.mxu1 %v1466_v40 }
  0x35   :  { %1396 = vmatpush3.bf16.msra.mxu1 %v1466_v40 }
  0x3a   :  { %1350 = vmatmul.mubr.msk.bf16.gmra.mrb[24].mxu0 %vm140_vm0, %v98_v45  ;;  %v79_v45 = vld [vmem:[%s2550_s0 + $0x1d0] sm:$0xff] }
  0x3b   :  { %1353 = vmatprep.mubr.msk.bf16.mxu0 %vm140_vm0, %v99_v46  ;;  %v80_v46 = vld [vmem:[%s2550_s0 + $0x1d8] sm:$0xff] }
  0x3c   :  { %v114_v49 = vpack.c.bf16 %v80_v46, %v79_v45 }
  0x42   :  { %1354 = vmatmul.mubr.msk.bf16.gmra.mrb[28].mxu0 %vm140_vm0, %v100_v51  ;;  %v83_v51 = vld [vmem:[%s2550_s0 + $0x1f0] sm:$0xff] }
  0x43   :  { %1357 = vmatprep.mubr.msk.bf16.mxu0 %vm140_vm0, %v101_v52  ;;  %v84_v52 = vld [vmem:[%s2550_s0 + $0x1f8] sm:$0xff] }
  0x44   :  { %v116_v53 = vpack.c.bf16 %v84_v52, %v83_v51 }
  0x4a   :  { %1358 = vmatmul.mubr.msk.bf16.gmra.mrb[32].mxu0 %vm140_vm0, %v102_v57 }
  0x4b   :  { %1361 = vmatprep.mubr.msk.bf16.mxu0 %vm140_vm0, %v103_v58 }
  0x52   :  { %1362 = vmatmul.mubr.msk.bf16.gmra.mrb[36].mxu0 %vm140_vm0, %v104_v63 }
  0x53   :  { %1365 = vmatprep.mubr.msk.bf16.mxu0 %vm140_vm0, %v105_v0 }
  0x5a   :  { %1366 = vmatmul.mubr.msk.bf16.gmra.mrb[40].mxu0 %vm140_vm0, %v106_v15 }
  0x5b   :  { %1369 = vmatprep.mubr.msk.bf16.mxu0 %vm140_vm0, %v107_v16 }
  0x62   :  { %1370 = vmatmul.mubr.msk.bf16.gmra.mrb[44].mxu0 %vm140_vm0, %v108_v26 }
  0x63   :  { %1373 = vmatprep.mubr.msk.bf16.mxu0 %vm140_vm0, %v109_v27 }
  0x6a   :  { %1374 = vmatmul.mubr.msk.bf16.gmra.mrb[48].mxu0 %vm140_vm0, %v110_v35 }
  0x6b   :  { %1377 = vmatprep.mubr.msk.bf16.mxu0 %vm140_vm0, %v111_v36 }
  0x72   :  { %1378 = vmatmul.mubr.msk.bf16.gmra.mrb[52].mxu0 %vm140_vm0, %v112_v43 }
  0x73   :  { %1381 = vmatprep.mubr.msk.bf16.mxu0 %vm140_vm0, %v113_v44 }
  0x7a   :  { %1382 = vmatmul.mubr.msk.bf16.gmra.mrb[56].mxu0 %vm140_vm0, %v114_v49 }
  0x7b   :  { %1385 = vmatprep.mubr.msk.bf16.mxu0 %vm140_vm0, %v115_v50 }
  0x82   :  { %1386 = vmatmul.mubr.msk.bf16.gmra.mrb[60].mxu0 %vm140_vm0, %v116_v53 }
  0xdd   :  { %v1327_v55 = vpop.f32.mrb[0].mxu0 }
  0xde   :  { %v280_v56 = vadd.f32 %v1327_v55, %v1966_v54  ;;  %v271_v57 = vpop.f32.mrb[1].mxu0 }
  0xdf   :  { %v272_v58 = vadd.f32 %v1966_v54, %v271_v57  ;;  %v1328_v59 = vpop.f32.mrb[2].mxu0 }
  0xe0   :  { %1467 = vtanh.f32 %v280_v56  ;;  %v283_v60 = vadd.f32 %v1328_v59, %v1966_v54  ;;  %v274_v61 = vpop.f32.mrb[3].mxu0 }
  0xe1   :  { %1469 = vtanh.f32 %v272_v58  ;;  %v275_v62 = vadd.f32 %v1966_v54, %v274_v61 }
  0xe2   :  { %1471 = vtanh.f32 %v283_v60 }
  0xe3   :  { %1473 = vtanh.f32 %v275_v62 }
  0xe5   :  { %v1331_v63 = vpop.f32.mrb[4].mxu0 }
  0xe6   :  { %v296_v0 = vadd.f32 %v1331_v63, %v1966_v54  ;;  %v287_v1 = vpop.f32.mrb[5].mxu0 }
  0xe7   :  { %v288_v4 = vadd.f32 %v1966_v54, %v287_v1  ;;  %v1332_v9 = vpop.f32.mrb[6].mxu0 }
  0xe8   :  { %1475 = vtanh.f32 %v296_v0  ;;  %v299_v10 = vadd.f32 %v1332_v9, %v1966_v54  ;;  %v290_v15 = vpop.f32.mrb[7].mxu0 }
  0xe9   :  { %1477 = vtanh.f32 %v288_v4  ;;  %v291_v16 = vadd.f32 %v1966_v54, %v290_v15 }
  0xea   :  { %v1468_v20 = vpop.eup %1467  ;;  %1479 = vtanh.f32 %v299_v10 }
  0xeb   :  { %v1470_v21 = vpop.eup %1469  ;;  %1481 = vtanh.f32 %v291_v16 }
  0xec   :  { %v1472_v22 = vpop.eup %1471 }
  0xed   :  { %v1474_v25 = vpop.eup %1473  ;;  %v1335_v26 = vpop.f32.mrb[8].mxu0  ;;  %v591_v27 = vpack.c.bf16 %v1472_v22, %v1468_v20 }
  0xee   :  { %v312_v28 = vadd.f32 %v1335_v26, %v1966_v54  ;;  %v303_v30 = vpop.f32.mrb[9].mxu0  ;;  %v590_v31 = vpack.c.bf16 %v1474_v25, %v1470_v21 }
  0xef   :  { %v304_v32 = vadd.f32 %v1966_v54, %v303_v30  ;;  %v1336_v33 = vpop.f32.mrb[10].mxu0 }
  0xf0   :  { %1483 = vtanh.f32 %v312_v28  ;;  %v315_v34 = vadd.f32 %v1336_v33, %v1966_v54  ;;  %v306_v35 = vpop.f32.mrb[11].mxu0  ;;  %1397 = vmatprep.mubr.msk.bf16.mxu1 %vm661_vm1, %v590_v31 }
  0xf1   :  { %1485 = vtanh.f32 %v304_v32  ;;  %v307_v36 = vadd.f32 %v1966_v54, %v306_v35  ;;  %1398 = vmatmul.mubr.msk.bf16.vlgmr.msra.gmra.mrb[0].mxu1 %vm661_vm1, %v591_v27 }
  0xf2   :  { %v1476_v37 = vpop.eup %1475  ;;  %1487 = vtanh.f32 %v315_v34 }
  0xf3   :  { %v1478_v38 = vpop.eup %1477  ;;  %1489 = vtanh.f32 %v307_v36 }
  0xf4   :  { %v1480_v39 = vpop.eup %1479 }
  0xf5   :  { %v1482_v40 = vpop.eup %1481  ;;  %v1339_v41 = vpop.f32.mrb[12].mxu0  ;;  %v593_v42 = vpack.c.bf16 %v1480_v39, %v1476_v37 }
  0xf6   :  { %v328_v43 = vadd.f32 %v1339_v41, %v1966_v54  ;;  %v319_v44 = vpop.f32.mrb[13].mxu0  ;;  %v592_v45 = vpack.c.bf16 %v1482_v40, %v1478_v38 }
  0xf7   :  { %v320_v46 = vadd.f32 %v1966_v54, %v319_v44  ;;  %v1340_v47 = vpop.f32.mrb[14].mxu0 }
  0xf8   :  { %1491 = vtanh.f32 %v328_v43  ;;  %v331_v48 = vadd.f32 %v1340_v47, %v1966_v54  ;;  %v322_v49 = vpop.f32.mrb[15].mxu0  ;;  %1401 = vmatprep.mubr.msk.bf16.mxu1 %vm661_vm1, %v592_v45 }
  0xf9   :  { %1493 = vtanh.f32 %v320_v46  ;;  %v323_v50 = vadd.f32 %v1966_v54, %v322_v49  ;;  %1402 = vmatmul.mubr.msk.bf16.gmra.mrb[4].mxu1 %vm661_vm1, %v593_v42 }
  0xfa   :  { %v1484_v51 = vpop.eup %1483  ;;  %1495 = vtanh.f32 %v331_v48 }
  0xfb   :  { %v1486_v52 = vpop.eup %1485  ;;  %1497 = vtanh.f32 %v323_v50 }
  0xfc   :  { %v1488_v53 = vpop.eup %1487 }
  0xfd   :  { %v1490_v55 = vpop.eup %1489  ;;  %v1343_v56 = vpop.f32.mrb[16].mxu0  ;;  %v595_v57 = vpack.c.bf16 %v1488_v53, %v1484_v51 }
  0xfe   :  { %v344_v58 = vadd.f32 %v1343_v56, %v1966_v54  ;;  %v335_v59 = vpop.f32.mrb[17].mxu0  ;;  %v594_v60 = vpack.c.bf16 %v1490_v55, %v1486_v52 }
  0xff   :  { %v336_v61 = vadd.f32 %v1966_v54, %v335_v59  ;;  %v1344_v62 = vpop.f32.mrb[18].mxu0 }
 0x100   :  { %1499 = vtanh.f32 %v344_v58  ;;  %v347_v63 = vadd.f32 %v1344_v62, %v1966_v54  ;;  %v338_v0 = vpop.f32.mrb[19].mxu0  ;;  %1405 = vmatprep.mubr.msk.bf16.mxu1 %vm661_vm1, %v594_v60 }
 0x101   :  { %1501 = vtanh.f32 %v336_v61  ;;  %v339_v1 = vadd.f32 %v1966_v54, %v338_v0  ;;  %1406 = vmatmul.mubr.msk.bf16.gmra.mrb[8].mxu1 %vm661_vm1, %v595_v57 }
 0x102   :  { %v1492_v4 = vpop.eup %1491  ;;  %1503 = vtanh.f32 %v347_v63 }
 0x103   :  { %v1494_v9 = vpop.eup %1493  ;;  %1505 = vtanh.f32 %v339_v1 }
 0x104   :  { %v1496_v10 = vpop.eup %1495 }
 0x105   :  { %v1498_v15 = vpop.eup %1497  ;;  %v1347_v16 = vpop.f32.mrb[20].mxu0  ;;  %v597_v20 = vpack.c.bf16 %v1496_v10, %v1492_v4 }
 0x106   :  { %v360_v21 = vadd.f32 %v1347_v16, %v1966_v54  ;;  %v351_v22 = vpop.f32.mrb[21].mxu0  ;;  %v596_v25 = vpack.c.bf16 %v1498_v15, %v1494_v9 }
 0x107   :  { %v352_v26 = vadd.f32 %v1966_v54, %v351_v22  ;;  %v1348_v27 = vpop.f32.mrb[22].mxu0 }
 0x108   :  { %1507 = vtanh.f32 %v360_v21  ;;  %v363_v28 = vadd.f32 %v1348_v27, %v1966_v54  ;;  %v354_v30 = vpop.f32.mrb[23].mxu0  ;;  %1409 = vmatprep.mubr.msk.bf16.mxu1 %vm661_vm1, %v596_v25 }
 0x109   :  { %1509 = vtanh.f32 %v352_v26  ;;  %v355_v31 = vadd.f32 %v1966_v54, %v354_v30  ;;  %1410 = vmatmul.mubr.msk.bf16.gmra.mrb[12].mxu1 %vm661_vm1, %v597_v20 }
 0x10a   :  { %v1500_v32 = vpop.eup %1499  ;;  %1511 = vtanh.f32 %v363_v28 }
 0x10b   :  { %v1502_v33 = vpop.eup %1501  ;;  %1513 = vtanh.f32 %v355_v31 }
 0x10c   :  { %v1504_v34 = vpop.eup %1503 }
 0x10d   :  { %v1506_v35 = vpop.eup %1505  ;;  %v1351_v36 = vpop.f32.mrb[24].mxu0  ;;  %v599_v37 = vpack.c.bf16 %v1504_v34, %v1500_v32 }
 0x10e   :  { %v376_v38 = vadd.f32 %v1351_v36, %v1966_v54  ;;  %v367_v39 = vpop.f32.mrb[25].mxu0  ;;  %v598_v40 = vpack.c.bf16 %v1506_v35, %v1502_v33 }
 0x10f   :  { %v368_v41 = vadd.f32 %v1966_v54, %v367_v39  ;;  %v1352_v42 = vpop.f32.mrb[26].mxu0 }
 0x110   :  { %1515 = vtanh.f32 %v376_v38  ;;  %v379_v43 = vadd.f32 %v1352_v42, %v1966_v54  ;;  %v370_v44 = vpop.f32.mrb[27].mxu0  ;;  %1413 = vmatprep.mubr.msk.bf16.mxu1 %vm661_vm1, %v598_v40 }
 0x111   :  { %1517 = vtanh.f32 %v368_v41  ;;  %v371_v45 = vadd.f32 %v1966_v54, %v370_v44  ;;  %1414 = vmatmul.mubr.msk.bf16.gmra.mrb[16].mxu1 %vm661_vm1, %v599_v37 }
 0x112   :  { %v1508_v46 = vpop.eup %1507  ;;  %1519 = vtanh.f32 %v379_v43 }
 0x113   :  { %v1510_v47 = vpop.eup %1509  ;;  %1521 = vtanh.f32 %v371_v45 }
 0x114   :  { %v1512_v48 = vpop.eup %1511 }
 0x115   :  { %v1514_v49 = vpop.eup %1513  ;;  %v1355_v50 = vpop.f32.mrb[28].mxu0  ;;  %v601_v51 = vpack.c.bf16 %v1512_v48, %v1508_v46 }
 0x116   :  { %v392_v52 = vadd.f32 %v1355_v50, %v1966_v54  ;;  %v383_v53 = vpop.f32.mrb[29].mxu0  ;;  %v600_v55 = vpack.c.bf16 %v1514_v49, %v1510_v47 }
 0x117   :  { %v384_v56 = vadd.f32 %v1966_v54, %v383_v53  ;;  %v1356_v57 = vpop.f32.mrb[30].mxu0 }
 0x118   :  { %1523 = vtanh.f32 %v392_v52  ;;  %v395_v58 = vadd.f32 %v1356_v57, %v1966_v54  ;;  %v386_v59 = vpop.f32.mrb[31].mxu0  ;;  %1417 = vmatprep.mubr.msk.bf16.mxu1 %vm661_vm1, %v600_v55 }
 0x119   :  { %1525 = vtanh.f32 %v384_v56  ;;  %v387_v60 = vadd.f32 %v1966_v54, %v386_v59  ;;  %1418 = vmatmul.mubr.msk.bf16.gmra.mrb[20].mxu1 %vm661_vm1, %v601_v51 }
 0x11a   :  { %v1516_v61 = vpop.eup %1515  ;;  %1527 = vtanh.f32 %v395_v58 }
 0x11b   :  { %v1518_v62 = vpop.eup %1517  ;;  %1529 = vtanh.f32 %v387_v60 }
 0x11c   :  { %v1520_v63 = vpop.eup %1519 }
 0x11d   :  { %v1522_v0 = vpop.eup %1521  ;;  %v1359_v1 = vpop.f32.mrb[32].mxu0  ;;  %v603_v4 = vpack.c.bf16 %v1520_v63, %v1516_v61 }
 0x11e   :  { %v408_v9 = vadd.f32 %v1359_v1, %v1966_v54  ;;  %v399_v10 = vpop.f32.mrb[33].mxu0  ;;  %v602_v15 = vpack.c.bf16 %v1522_v0, %v1518_v62 }
 0x11f   :  { %v400_v16 = vadd.f32 %v1966_v54, %v399_v10  ;;  %v1360_v20 = vpop.f32.mrb[34].mxu0 }
 0x120   :  { %1531 = vtanh.f32 %v408_v9  ;;  %v411_v21 = vadd.f32 %v1360_v20, %v1966_v54  ;;  %v402_v22 = vpop.f32.mrb[35].mxu0  ;;  %1421 = vmatprep.mubr.msk.bf16.mxu1 %vm661_vm1, %v602_v15 }
 0x121   :  { %1533 = vtanh.f32 %v400_v16  ;;  %v403_v25 = vadd.f32 %v1966_v54, %v402_v22  ;;  %1422 = vmatmul.mubr.msk.bf16.gmra.mrb[24].mxu1 %vm661_vm1, %v603_v4 }
 0x122   :  { %v1524_v26 = vpop.eup %1523  ;;  %1535 = vtanh.f32 %v411_v21 }
 0x123   :  { %v1526_v27 = vpop.eup %1525  ;;  %1537 = vtanh.f32 %v403_v25 }
 0x124   :  { %v1528_v28 = vpop.eup %1527 }
 0x125   :  { %v1530_v30 = vpop.eup %1529  ;;  %v1363_v31 = vpop.f32.mrb[36].mxu0  ;;  %v605_v32 = vpack.c.bf16 %v1528_v28, %v1524_v26 }
 0x126   :  { %v424_v33 = vadd.f32 %v1363_v31, %v1966_v54  ;;  %v415_v34 = vpop.f32.mrb[37].mxu0  ;;  %v604_v35 = vpack.c.bf16 %v1530_v30, %v1526_v27 }
 0x127   :  { %v416_v36 = vadd.f32 %v1966_v54, %v415_v34  ;;  %v1364_v37 = vpop.f32.mrb[38].mxu0 }
 0x128   :  { %1539 = vtanh.f32 %v424_v33  ;;  %v427_v38 = vadd.f32 %v1364_v37, %v1966_v54  ;;  %v418_v39 = vpop.f32.mrb[39].mxu0  ;;  %1425 = vmatprep.mubr.msk.bf16.mxu1 %vm661_vm1, %v604_v35 }
 0x129   :  { %1541 = vtanh.f32 %v416_v36  ;;  %v419_v40 = vadd.f32 %v1966_v54, %v418_v39  ;;  %1426 = vmatmul.mubr.msk.bf16.gmra.mrb[28].mxu1 %vm661_vm1, %v605_v32 }
 0x12a   :  { %v1532_v41 = vpop.eup %1531  ;;  %1543 = vtanh.f32 %v427_v38 }
 0x12b   :  { %v1534_v42 = vpop.eup %1533  ;;  %1545 = vtanh.f32 %v419_v40 }
 0x12c   :  { %v1536_v43 = vpop.eup %1535 }
 0x12d   :  { %v1538_v44 = vpop.eup %1537  ;;  %v1367_v45 = vpop.f32.mrb[40].mxu0  ;;  %v607_v46 = vpack.c.bf16 %v1536_v43, %v1532_v41 }
 0x12e   :  { %v440_v47 = vadd.f32 %v1367_v45, %v1966_v54  ;;  %v431_v48 = vpop.f32.mrb[41].mxu0  ;;  %v606_v49 = vpack.c.bf16 %v1538_v44, %v1534_v42 }
 0x12f   :  { %v432_v50 = vadd.f32 %v1966_v54, %v431_v48  ;;  %v1368_v51 = vpop.f32.mrb[42].mxu0 }
 0x130   :  { %1547 = vtanh.f32 %v440_v47  ;;  %v443_v52 = vadd.f32 %v1368_v51, %v1966_v54  ;;  %v434_v53 = vpop.f32.mrb[43].mxu0  ;;  %1429 = vmatprep.mubr.msk.bf16.mxu1 %vm661_vm1, %v606_v49 }
 0x131   :  { %1549 = vtanh.f32 %v432_v50  ;;  %v435_v55 = vadd.f32 %v1966_v54, %v434_v53  ;;  %1430 = vmatmul.mubr.msk.bf16.gmra.mrb[32].mxu1 %vm661_vm1, %v607_v46 }
 0x132   :  { %v1540_v56 = vpop.eup %1539  ;;  %1551 = vtanh.f32 %v443_v52 }
 0x133   :  { %v1542_v57 = vpop.eup %1541  ;;  %1553 = vtanh.f32 %v435_v55 }
 0x134   :  { %v1544_v58 = vpop.eup %1543 }
 0x135   :  { %v1546_v59 = vpop.eup %1545  ;;  %v1371_v60 = vpop.f32.mrb[44].mxu0  ;;  %v609_v61 = vpack.c.bf16 %v1544_v58, %v1540_v56 }
 0x136   :  { %v456_v62 = vadd.f32 %v1371_v60, %v1966_v54  ;;  %v447_v63 = vpop.f32.mrb[45].mxu0  ;;  %v608_v0 = vpack.c.bf16 %v1546_v59, %v1542_v57 }
 0x137   :  { %v448_v1 = vadd.f32 %v1966_v54, %v447_v63  ;;  %v1372_v4 = vpop.f32.mrb[46].mxu0 }
 0x138   :  { %1555 = vtanh.f32 %v456_v62  ;;  %v459_v9 = vadd.f32 %v1372_v4, %v1966_v54  ;;  %v450_v10 = vpop.f32.mrb[47].mxu0  ;;  %1433 = vmatprep.mubr.msk.bf16.mxu1 %vm661_vm1, %v608_v0 }
 0x139   :  { %1557 = vtanh.f32 %v448_v1  ;;  %v451_v15 = vadd.f32 %v1966_v54, %v450_v10  ;;  %1434 = vmatmul.mubr.msk.bf16.gmra.mrb[36].mxu1 %vm661_vm1, %v609_v61 }
 0x13a   :  { %v1548_v16 = vpop.eup %1547  ;;  %1559 = vtanh.f32 %v459_v9 }
 0x13b   :  { %v1550_v20 = vpop.eup %1549  ;;  %1561 = vtanh.f32 %v451_v15 }
 0x13c   :  { %v1552_v21 = vpop.eup %1551 }
 0x13d   :  { %v1554_v22 = vpop.eup %1553  ;;  %v1375_v25 = vpop.f32.mrb[48].mxu0  ;;  %v611_v26 = vpack.c.bf16 %v1552_v21, %v1548_v16 }
 0x13e   :  { %v472_v27 = vadd.f32 %v1375_v25, %v1966_v54  ;;  %v463_v28 = vpop.f32.mrb[49].mxu0  ;;  %v610_v30 = vpack.c.bf16 %v1554_v22, %v1550_v20 }
 0x13f   :  { %v464_v31 = vadd.f32 %v1966_v54, %v463_v28  ;;  %v1376_v32 = vpop.f32.mrb[50].mxu0 }
 0x140   :  { %1563 = vtanh.f32 %v472_v27  ;;  %v475_v33 = vadd.f32 %v1376_v32, %v1966_v54  ;;  %v466_v34 = vpop.f32.mrb[51].mxu0  ;;  %1437 = vmatprep.mubr.msk.bf16.mxu1 %vm661_vm1, %v610_v30 }
 0x141   :  { %1565 = vtanh.f32 %v464_v31  ;;  %v467_v35 = vadd.f32 %v1966_v54, %v466_v34  ;;  %1438 = vmatmul.mubr.msk.bf16.gmra.mrb[40].mxu1 %vm661_vm1, %v611_v26 }
 0x142   :  { %v1556_v36 = vpop.eup %1555  ;;  %1567 = vtanh.f32 %v475_v33 }
 0x143   :  { %v1558_v37 = vpop.eup %1557  ;;  %1569 = vtanh.f32 %v467_v35 }
 0x144   :  { %v1560_v38 = vpop.eup %1559 }
 0x145   :  { %v1562_v39 = vpop.eup %1561  ;;  %v1379_v40 = vpop.f32.mrb[52].mxu0  ;;  %v613_v41 = vpack.c.bf16 %v1560_v38, %v1556_v36 }
 0x146   :  { %v488_v42 = vadd.f32 %v1379_v40, %v1966_v54  ;;  %v479_v43 = vpop.f32.mrb[53].mxu0  ;;  %v612_v44 = vpack.c.bf16 %v1562_v39, %v1558_v37 }
 0x147   :  { %v480_v45 = vadd.f32 %v1966_v54, %v479_v43  ;;  %v1380_v46 = vpop.f32.mrb[54].mxu0 }
 0x148   :  { %1571 = vtanh.f32 %v488_v42  ;;  %v491_v47 = vadd.f32 %v1380_v46, %v1966_v54  ;;  %v482_v48 = vpop.f32.mrb[55].mxu0  ;;  %1441 = vmatprep.mubr.msk.bf16.mxu1 %vm661_vm1, %v612_v44  ;;  %v2067_v42 = vld [vmem:[%s2553_s4] ss:$0 sm:$0xff] }
 0x149   :  { %1573 = vtanh.f32 %v480_v45  ;;  %v483_v49 = vadd.f32 %v1966_v54, %v482_v48  ;;  %1442 = vmatmul.mubr.msk.bf16.gmra.mrb[44].mxu1 %vm661_vm1, %v613_v41 }
 0x14a   :  { %v1564_v50 = vpop.eup %1563  ;;  %1575 = vtanh.f32 %v491_v47 }
 0x14b   :  { %v1566_v51 = vpop.eup %1565  ;;  %1577 = vtanh.f32 %v483_v49 }
 0x14c   :  { %v1568_v52 = vpop.eup %1567 }
 0x14d   :  { %v1570_v53 = vpop.eup %1569  ;;  %v1383_v55 = vpop.f32.mrb[56].mxu0  ;;  %v615_v56 = vpack.c.bf16 %v1568_v52, %v1564_v50 }
 0x14e   :  { %v504_v57 = vadd.f32 %v1383_v55, %v1966_v54  ;;  %v495_v58 = vpop.f32.mrb[57].mxu0  ;;  %v614_v59 = vpack.c.bf16 %v1570_v53, %v1566_v51 }
 0x14f   :  { %v496_v60 = vadd.f32 %v1966_v54, %v495_v58  ;;  %v1384_v61 = vpop.f32.mrb[58].mxu0 }
 0x150   :  { %1579 = vtanh.f32 %v504_v57  ;;  %v507_v62 = vadd.f32 %v1384_v61, %v1966_v54  ;;  %v498_v63 = vpop.f32.mrb[59].mxu0  ;;  %1445 = vmatprep.mubr.msk.bf16.mxu1 %vm661_vm1, %v614_v59 }
 0x151   :  { %1581 = vtanh.f32 %v496_v60  ;;  %v499_v0 = vadd.f32 %v1966_v54, %v498_v63  ;;  %1446 = vmatmul.mubr.msk.bf16.gmra.mrb[48].mxu1 %vm661_vm1, %v615_v56 }
 0x152   :  { %v1572_v1 = vpop.eup %1571  ;;  %1583 = vtanh.f32 %v507_v62 }
 0x153   :  { %v1574_v4 = vpop.eup %1573  ;;  %1585 = vtanh.f32 %v499_v0 }
 0x154   :  { %v1576_v9 = vpop.eup %1575 }
 0x155   :  { %v1578_v10 = vpop.eup %1577  ;;  %v1387_v15 = vpop.f32.mrb[60].mxu0  ;;  %v617_v16 = vpack.c.bf16 %v1576_v9, %v1572_v1 }
 0x156   :  { %v520_v20 = vadd.f32 %v1387_v15, %v1966_v54  ;;  %v511_v21 = vpop.f32.mrb[61].mxu0  ;;  %v616_v22 = vpack.c.bf16 %v1578_v10, %v1574_v4 }
 0x157   :  { %v512_v25 = vadd.f32 %v1966_v54, %v511_v21  ;;  %v1388_v26 = vpop.f32.mrb[62].mxu0 }
 0x158   :  { %1587 = vtanh.f32 %v520_v20  ;;  %v523_v27 = vadd.f32 %v1388_v26, %v1966_v54  ;;  %v514_v28 = vpop.f32.mrb[63].mxu0  ;;  %1449 = vmatprep.mubr.msk.bf16.mxu1 %vm661_vm1, %v616_v22 }
 0x159   :  { %1589 = vtanh.f32 %v512_v25  ;;  %v515_v30 = vadd.f32 %v1966_v54, %v514_v28  ;;  %1450 = vmatmul.mubr.msk.bf16.gmra.mrb[52].mxu1 %vm661_vm1, %v617_v16 }
 0x15a   :  { %v1580_v31 = vpop.eup %1579  ;;  %1591 = vtanh.f32 %v523_v27 }
 0x15b   :  { %v1582_v32 = vpop.eup %1581  ;;  %1593 = vtanh.f32 %v515_v30 }
 0x15c   :  { %v1584_v33 = vpop.eup %1583 }
 0x15d   :  { %v1586_v34 = vpop.eup %1585  ;;  %v619_v35 = vpack.c.bf16 %v1584_v33, %v1580_v31 }
 0x15e   :  { %v618_v36 = vpack.c.bf16 %v1586_v34, %v1582_v32 }
 0x160   :  { %1453 = vmatprep.mubr.msk.bf16.mxu1 %vm661_vm1, %v618_v36 }
 0x161   :  { %1454 = vmatmul.mubr.msk.bf16.gmra.mrb[56].mxu1 %vm661_vm1, %v619_v35 }
 0x162   :  { %v1588_v37 = vpop.eup %1587 }
 0x163   :  { %v1590_v38 = vpop.eup %1589 }
 0x164   :  { %v1592_v39 = vpop.eup %1591 }
 0x165   :  { %v1594_v40 = vpop.eup %1593  ;;  %v621_v41 = vpack.c.bf16 %v1592_v39, %v1588_v37 }
 0x166   :  { %v620_v54 = vpack.c.bf16 %v1594_v40, %v1590_v38  ;;  %v1596_v38 = vld [vmem:[%s2550_s0 + $0x80] sm:$0xff] }
 0x168   :  { %1457 = vmatprep.mubr.msk.bf16.mxu1 %vm661_vm1, %v620_v54  ;;  %v1598_v54 = vld [vmem:[%s2550_s0 + $0x88] sm:$0xff] }
 0x169   :  { %1458 = vmatmul.mubr.msk.bf16.gmra.mrb[60].mxu1 %vm661_vm1, %v621_v41  ;;  %v1597_v41 = vld [vmem:[%s2550_s0 + $0x98] sm:$0xff] }
 0x1c4   :  { %v1399_v43 = vpop.f32.mrb[0].mxu1 }
 0x1c5   :  { %v801_v44 = vadd.f32 %v1399_v43, %v2067_v42  ;;  %v792_v45 = vpop.f32.mrb[1].mxu1 }
 0x1c6   :  { %v793_v46 = vadd.f32 %v2067_v42, %v792_v45  ;;  %v1400_v47 = vpop.f32.mrb[2].mxu1 }
 0x1c7   :  { %v1049_v48 = vadd.f32 %v801_v44, %v1694_v5  ;;  %v804_v49 = vadd.f32 %v1400_v47, %v2067_v42  ;;  %v795_v50 = vpop.f32.mrb[3].mxu1 }
 0x1c8   :  { %v1047_v51 = vadd.f32 %v793_v46, %v1682_v2  ;;  %v796_v52 = vadd.f32 %v2067_v42, %v795_v50 }
 0x1c9   :  { %1113 = vst.msk [vmem:[%s2554_s5 + $0x10] sm:$0xff] %vm140_vm0, %v1049_v48  ;;  %v1050_v53 = vadd.f32 %v804_v49, %v1699_v6  ;;  %v1599_v49 = vld [vmem:[%s2550_s0 + $0xb0] sm:$0xff] }
 0x1ca   :  { %1111 = vst.msk [vmem:[%s2554_s5] sm:$0xff] %vm140_vm0, %v1047_v51  ;;  %v1048_v5 = vadd.f32 %v796_v52, %v1687_v3 }
 0x1cb   :  { %1114 = vst.msk [vmem:[%s2554_s5 + $0x18] sm:$0xff] %vm140_vm0, %v1050_v53  ;;  %v1600_v53 = vld [vmem:[%s2550_s0 + $0xa0] sm:$0xff] }
 0x1cc   :  { %1112 = vst.msk [vmem:[%s2554_s5 + $0x8] sm:$0xff] %vm140_vm0, %v1048_v5  ;;  %v1403_v2 = vpop.f32.mrb[4].mxu1 }
 0x1cd   :  { %v817_v6 = vadd.f32 %v1403_v2, %v2067_v42  ;;  %v808_v55 = vpop.f32.mrb[5].mxu1 }
 0x1ce   :  { %v809_v56 = vadd.f32 %v2067_v42, %v808_v55  ;;  %v1404_v57 = vpop.f32.mrb[6].mxu1 }
 0x1cf   :  { %v1053_v58 = vadd.f32 %v817_v6, %v1721_v11  ;;  %v820_v3 = vadd.f32 %v1404_v57, %v2067_v42  ;;  %v811_v59 = vpop.f32.mrb[7].mxu1  ;;  %v1601_v6 = vld [vmem:[%s2550_s0 + $0xb8] sm:$0xff] }
 0x1d0   :  { %v1051_v60 = vadd.f32 %v809_v56, %v1704_v7  ;;  %v812_v61 = vadd.f32 %v2067_v42, %v811_v59  ;;  %v1602_v56 = vld [vmem:[%s2550_s0 + $0xa8] sm:$0xff] }
 0x1d1   :  { %1117 = vst.msk [vmem:[%s2554_s5 + $0x30] sm:$0xff] %vm140_vm0, %v1053_v58  ;;  %v1054_v62 = vadd.f32 %v820_v3, %v1726_v12 }
 0x1d2   :  { %1115 = vst.msk [vmem:[%s2554_s5 + $0x20] sm:$0xff] %vm140_vm0, %v1051_v60  ;;  %v1052_v11 = vadd.f32 %v812_v61, %v1709_v8 }
 0x1d3   :  { %1118 = vst.msk [vmem:[%s2554_s5 + $0x38] sm:$0xff] %vm140_vm0, %v1054_v62  ;;  %v1603_v62 = vld [vmem:[%s2550_s0 + $0xd0] sm:$0xff] }
 0x1d4   :  { %1116 = vst.msk [vmem:[%s2554_s5 + $0x28] sm:$0xff] %vm140_vm0, %v1052_v11  ;;  %v1407_v7 = vpop.f32.mrb[8].mxu1 }
 0x1d5   :  { %v833_v12 = vadd.f32 %v1407_v7, %v2067_v42  ;;  %v824_v63 = vpop.f32.mrb[9].mxu1 }
 0x1d6   :  { %v825_v0 = vadd.f32 %v2067_v42, %v824_v63  ;;  %v1408_v1 = vpop.f32.mrb[10].mxu1  ;;  %v1604_v63 = vld [vmem:[%s2550_s0 + $0xc0] sm:$0xff] }
 0x1d7   :  { %v1057_v4 = vadd.f32 %v833_v12, %v1747_v17  ;;  %v836_v8 = vadd.f32 %v1408_v1, %v2067_v42  ;;  %v827_v9 = vpop.f32.mrb[11].mxu1 }
 0x1d8   :  { %v1055_v10 = vadd.f32 %v825_v0, %v1731_v13  ;;  %v828_v15 = vadd.f32 %v2067_v42, %v827_v9  ;;  %v1606_v9 = vld [vmem:[%s2550_s0 + $0xc8] sm:$0xff] }
 0x1d9   :  { %1121 = vst.msk [vmem:[%s2554_s5 + $0x50] sm:$0xff] %vm140_vm0, %v1057_v4  ;;  %v1058_v16 = vadd.f32 %v836_v8, %v1752_v18  ;;  %v1605_v4 = vld [vmem:[%s2550_s0 + $0xd8] sm:$0xff] }
 0x1da   :  { %1119 = vst.msk [vmem:[%s2554_s5 + $0x40] sm:$0xff] %vm140_vm0, %v1055_v10  ;;  %v1056_v17 = vadd.f32 %v828_v15, %v1736_v14 }
 0x1db   :  { %1122 = vst.msk [vmem:[%s2554_s5 + $0x58] sm:$0xff] %vm140_vm0, %v1058_v16 }
 0x1dc   :  { %1120 = vst.msk [vmem:[%s2554_s5 + $0x48] sm:$0xff] %vm140_vm0, %v1056_v17  ;;  %v1411_v13 = vpop.f32.mrb[12].mxu1 }
 0x1dd   :  { %v849_v18 = vadd.f32 %v1411_v13, %v2067_v42  ;;  %v840_v20 = vpop.f32.mrb[13].mxu1 }
 0x1de   :  { %v841_v21 = vadd.f32 %v2067_v42, %v840_v20  ;;  %v1412_v22 = vpop.f32.mrb[14].mxu1  ;;  %v1607_v20 = vld [vmem:[%s2550_s0 + $0xf0] sm:$0xff] }
 0x1df   :  { %v1061_v25 = vadd.f32 %v849_v18, %v1770_v23  ;;  %v852_v14 = vadd.f32 %v1412_v22, %v2067_v42  ;;  %v843_v26 = vpop.f32.mrb[15].mxu1  ;;  %v1595_v23 = vld [vmem:[%s2550_s0 + $0x68] sm:$0xff] }
 0x1e0   :  { %v1059_v27 = vadd.f32 %v841_v21, %v1757_v19  ;;  %v844_v28 = vadd.f32 %v2067_v42, %v843_v26 }
 0x1e1   :  { %1125 = vst.msk [vmem:[%s2554_s5 + $0x70] sm:$0xff] %vm140_vm0, %v1061_v25  ;;  %v1062_v30 = vadd.f32 %v852_v14, %v1775_v24  ;;  %v1608_v14 = vld [vmem:[%s2550_s0 + $0xe0] sm:$0xff] }
 0x1e2   :  { %1123 = vst.msk [vmem:[%s2554_s5 + $0x60] sm:$0xff] %vm140_vm0, %v1059_v27  ;;  %v1060_v31 = vadd.f32 %v1595_v23, %v844_v28  ;;  %v1609_v28 = vld [vmem:[%s2550_s0 + $0xf8] sm:$0xff]  ;;  %v1610_v23 = vld [vmem:[%s2550_s0 + $0xe8] sm:$0xff] }
 0x1e3   :  { %1126 = vst.msk [vmem:[%s2554_s5 + $0x78] sm:$0xff] %vm140_vm0, %v1062_v30 }
 0x1e4   :  { %1124 = vst.msk [vmem:[%s2554_s5 + $0x68] sm:$0xff] %vm140_vm0, %v1060_v31  ;;  %v1415_v19 = vpop.f32.mrb[16].mxu1 }
 0x1e5   :  { %v865_v24 = vadd.f32 %v1415_v19, %v2067_v42  ;;  %v856_v32 = vpop.f32.mrb[17].mxu1 }
 0x1e6   :  { %v857_v33 = vadd.f32 %v2067_v42, %v856_v32  ;;  %v1416_v34 = vpop.f32.mrb[18].mxu1 }
 0x1e7   :  { %v1065_v35 = vadd.f32 %v865_v24, %v1790_v29  ;;  %v868_v36 = vadd.f32 %v1416_v34, %v2067_v42  ;;  %v859_v37 = vpop.f32.mrb[19].mxu1 }
 0x1e8   :  { %v1063_v39 = vadd.f32 %v1596_v38, %v857_v33  ;;  %v860_v40 = vadd.f32 %v2067_v42, %v859_v37 }
 0x1e9   :  { %1129 = vst.msk [vmem:[%s2554_s5 + $0x90] sm:$0xff] %vm140_vm0, %v1065_v35  ;;  %v1066_v29 = vadd.f32 %v1597_v41, %v868_v36  ;;  %v1611_v35 = vld [vmem:[%s2550_s0 + $0x110] sm:$0xff] }
 0x1ea   :  { %1127 = vst.msk [vmem:[%s2554_s5 + $0x80] sm:$0xff] %vm140_vm0, %v1063_v39  ;;  %v1064_v43 = vadd.f32 %v1598_v54, %v860_v40  ;;  %v1612_v39 = vld [vmem:[%s2550_s0 + $0x100] sm:$0xff] }
 0x1eb   :  { %1130 = vst.msk [vmem:[%s2554_s5 + $0x98] sm:$0xff] %vm140_vm0, %v1066_v29  ;;  %v1613_v29 = vld [vmem:[%s2550_s0 + $0x118] sm:$0xff] }
 0x1ec   :  { %1128 = vst.msk [vmem:[%s2554_s5 + $0x88] sm:$0xff] %vm140_vm0, %v1064_v43  ;;  %v1419_v44 = vpop.f32.mrb[20].mxu1  ;;  %v1614_v43 = vld [vmem:[%s2550_s0 + $0x108] sm:$0xff] }
 0x1ed   :  { %v881_v45 = vadd.f32 %v1419_v44, %v2067_v42  ;;  %v872_v46 = vpop.f32.mrb[21].mxu1 }
 0x1ee   :  { %v873_v47 = vadd.f32 %v2067_v42, %v872_v46  ;;  %v1420_v48 = vpop.f32.mrb[22].mxu1 }
 0x1ef   :  { %v1069_v50 = vadd.f32 %v1599_v49, %v881_v45  ;;  %v884_v51 = vadd.f32 %v1420_v48, %v2067_v42  ;;  %v875_v52 = vpop.f32.mrb[23].mxu1 }
 0x1f0   :  { %v1067_v5 = vadd.f32 %v1600_v53, %v873_v47  ;;  %v876_v2 = vadd.f32 %v2067_v42, %v875_v52 }
 0x1f1   :  { %1133 = vst.msk [vmem:[%s2554_s5 + $0xb0] sm:$0xff] %vm140_vm0, %v1069_v50  ;;  %v1070_v55 = vadd.f32 %v1601_v6, %v884_v51  ;;  %v1615_v50 = vld [vmem:[%s2550_s0 + $0x130] sm:$0xff] }
 0x1f2   :  { %1131 = vst.msk [vmem:[%s2554_s5 + $0xa0] sm:$0xff] %vm140_vm0, %v1067_v5  ;;  %v1068_v57 = vadd.f32 %v1602_v56, %v876_v2  ;;  %v1616_v5 = vld [vmem:[%s2550_s0 + $0x120] sm:$0xff] }
 0x1f3   :  { %1134 = vst.msk [vmem:[%s2554_s5 + $0xb8] sm:$0xff] %vm140_vm0, %v1070_v55  ;;  %v1617_v55 = vld [vmem:[%s2550_s0 + $0x138] sm:$0xff] }
 0x1f4   :  { %1132 = vst.msk [vmem:[%s2554_s5 + $0xa8] sm:$0xff] %vm140_vm0, %v1068_v57  ;;  %v1423_v58 = vpop.f32.mrb[24].mxu1  ;;  %v1618_v57 = vld [vmem:[%s2550_s0 + $0x128] sm:$0xff] }
 0x1f5   :  { %v897_v3 = vadd.f32 %v1423_v58, %v2067_v42  ;;  %v888_v59 = vpop.f32.mrb[25].mxu1 }
 0x1f6   :  { %v889_v60 = vadd.f32 %v2067_v42, %v888_v59  ;;  %v1424_v61 = vpop.f32.mrb[26].mxu1 }
 0x1f7   :  { %v1073_v11 = vadd.f32 %v1603_v62, %v897_v3  ;;  %v900_v7 = vadd.f32 %v1424_v61, %v2067_v42  ;;  %v891_v12 = vpop.f32.mrb[27].mxu1 }
 0x1f8   :  { %v1071_v0 = vadd.f32 %v1604_v63, %v889_v60  ;;  %v892_v1 = vadd.f32 %v2067_v42, %v891_v12 }
 0x1f9   :  { %1137 = vst.msk [vmem:[%s2554_s5 + $0xd0] sm:$0xff] %vm140_vm0, %v1073_v11  ;;  %v1074_v8 = vadd.f32 %v1605_v4, %v900_v7  ;;  %v1619_v11 = vld [vmem:[%s2550_s0 + $0x150] sm:$0xff] }
 0x1fa   :  { %1135 = vst.msk [vmem:[%s2554_s5 + $0xc0] sm:$0xff] %vm140_vm0, %v1071_v0  ;;  %v1072_v10 = vadd.f32 %v1606_v9, %v892_v1  ;;  %v1620_v0 = vld [vmem:[%s2550_s0 + $0x140] sm:$0xff] }
 0x1fb   :  { %1138 = vst.msk [vmem:[%s2554_s5 + $0xd8] sm:$0xff] %vm140_vm0, %v1074_v8  ;;  %v1621_v8 = vld [vmem:[%s2550_s0 + $0x158] sm:$0xff] }
 0x1fc   :  { %1136 = vst.msk [vmem:[%s2554_s5 + $0xc8] sm:$0xff] %vm140_vm0, %v1072_v10  ;;  %v1427_v15 = vpop.f32.mrb[28].mxu1  ;;  %v1622_v10 = vld [vmem:[%s2550_s0 + $0x148] sm:$0xff] }
 0x1fd   :  { %v913_v16 = vadd.f32 %v1427_v15, %v2067_v42  ;;  %v904_v17 = vpop.f32.mrb[29].mxu1 }
 0x1fe   :  { %v905_v13 = vadd.f32 %v2067_v42, %v904_v17  ;;  %v1428_v18 = vpop.f32.mrb[30].mxu1 }
 0x1ff   :  { %v1077_v21 = vadd.f32 %v1607_v20, %v913_v16  ;;  %v916_v22 = vadd.f32 %v1428_v18, %v2067_v42  ;;  %v907_v25 = vpop.f32.mrb[31].mxu1 }
 0x200   :  { %v1075_v26 = vadd.f32 %v1608_v14, %v905_v13  ;;  %v908_v27 = vadd.f32 %v2067_v42, %v907_v25 }
 0x201   :  { %1141 = vst.msk [vmem:[%s2554_s5 + $0xf0] sm:$0xff] %vm140_vm0, %v1077_v21  ;;  %v1078_v30 = vadd.f32 %v1609_v28, %v916_v22  ;;  %v1623_v21 = vld [vmem:[%s2550_s0 + $0x170] sm:$0xff] }
 0x202   :  { %1139 = vst.msk [vmem:[%s2554_s5 + $0xe0] sm:$0xff] %vm140_vm0, %v1075_v26  ;;  %v1076_v31 = vadd.f32 %v1610_v23, %v908_v27  ;;  %v1624_v26 = vld [vmem:[%s2550_s0 + $0x160] sm:$0xff] }
 0x203   :  { %1142 = vst.msk [vmem:[%s2554_s5 + $0xf8] sm:$0xff] %vm140_vm0, %v1078_v30  ;;  %v1625_v30 = vld [vmem:[%s2550_s0 + $0x178] sm:$0xff] }
 0x204   :  { %1140 = vst.msk [vmem:[%s2554_s5 + $0xe8] sm:$0xff] %vm140_vm0, %v1076_v31  ;;  %v1431_v19 = vpop.f32.mrb[32].mxu1  ;;  %v1626_v31 = vld [vmem:[%s2550_s0 + $0x168] sm:$0xff] }
 0x205   :  { %v929_v24 = vadd.f32 %v1431_v19, %v2067_v42  ;;  %v920_v32 = vpop.f32.mrb[33].mxu1 }
 0x206   :  { %v921_v33 = vadd.f32 %v2067_v42, %v920_v32  ;;  %v1432_v34 = vpop.f32.mrb[34].mxu1 }
 0x207   :  { %v1081_v36 = vadd.f32 %v1611_v35, %v929_v24  ;;  %v932_v37 = vadd.f32 %v1432_v34, %v2067_v42  ;;  %v923_v38 = vpop.f32.mrb[35].mxu1 }
 0x208   :  { %v1079_v40 = vadd.f32 %v1612_v39, %v921_v33  ;;  %v924_v41 = vadd.f32 %v2067_v42, %v923_v38 }
 0x209   :  { %1145 = vst.msk [vmem:[%s2554_s5 + $0x110] sm:$0xff] %vm140_vm0, %v1081_v36  ;;  %v1082_v54 = vadd.f32 %v1613_v29, %v932_v37  ;;  %v1627_v36 = vld [vmem:[%s2550_s0 + $0x190] sm:$0xff] }
 0x20a   :  { %1143 = vst.msk [vmem:[%s2554_s5 + $0x100] sm:$0xff] %vm140_vm0, %v1079_v40  ;;  %v1080_v44 = vadd.f32 %v1614_v43, %v924_v41  ;;  %v1628_v40 = vld [vmem:[%s2550_s0 + $0x180] sm:$0xff] }
 0x20b   :  { %1146 = vst.msk [vmem:[%s2554_s5 + $0x118] sm:$0xff] %vm140_vm0, %v1082_v54  ;;  %v1629_v54 = vld [vmem:[%s2550_s0 + $0x198] sm:$0xff] }
 0x20c   :  { %1144 = vst.msk [vmem:[%s2554_s5 + $0x108] sm:$0xff] %vm140_vm0, %v1080_v44  ;;  %v1435_v45 = vpop.f32.mrb[36].mxu1  ;;  %v1630_v44 = vld [vmem:[%s2550_s0 + $0x188] sm:$0xff] }
 0x20d   :  { %v945_v46 = vadd.f32 %v1435_v45, %v2067_v42  ;;  %v936_v47 = vpop.f32.mrb[37].mxu1 }
 0x20e   :  { %v937_v48 = vadd.f32 %v2067_v42, %v936_v47  ;;  %v1436_v49 = vpop.f32.mrb[38].mxu1 }
 0x20f   :  { %v1085_v51 = vadd.f32 %v1615_v50, %v945_v46  ;;  %v948_v52 = vadd.f32 %v1436_v49, %v2067_v42  ;;  %v939_v53 = vpop.f32.mrb[39].mxu1 }
 0x210   :  { %v1083_v2 = vadd.f32 %v1616_v5, %v937_v48  ;;  %v940_v6 = vadd.f32 %v2067_v42, %v939_v53 }
 0x211   :  { %1149 = vst.msk [vmem:[%s2554_s5 + $0x130] sm:$0xff] %vm140_vm0, %v1085_v51  ;;  %v1086_v56 = vadd.f32 %v1617_v55, %v948_v52  ;;  %v1631_v51 = vld [vmem:[%s2550_s0 + $0x1b0] sm:$0xff] }
 0x212   :  { %1147 = vst.msk [vmem:[%s2554_s5 + $0x120] sm:$0xff] %vm140_vm0, %v1083_v2  ;;  %v1084_v58 = vadd.f32 %v1618_v57, %v940_v6  ;;  %v1632_v2 = vld [vmem:[%s2550_s0 + $0x1a0] sm:$0xff] }
 0x213   :  { %1150 = vst.msk [vmem:[%s2554_s5 + $0x138] sm:$0xff] %vm140_vm0, %v1086_v56  ;;  %v1633_v56 = vld [vmem:[%s2550_s0 + $0x1b8] sm:$0xff] }
 0x214   :  { %1148 = vst.msk [vmem:[%s2554_s5 + $0x128] sm:$0xff] %vm140_vm0, %v1084_v58  ;;  %v1439_v3 = vpop.f32.mrb[40].mxu1  ;;  %v1634_v58 = vld [vmem:[%s2550_s0 + $0x1a8] sm:$0xff] }
 0x215   :  { %v961_v59 = vadd.f32 %v1439_v3, %v2067_v42  ;;  %v952_v60 = vpop.f32.mrb[41].mxu1 }
 0x216   :  { %v953_v61 = vadd.f32 %v2067_v42, %v952_v60  ;;  %v1440_v62 = vpop.f32.mrb[42].mxu1 }
 0x217   :  { %v1089_v7 = vadd.f32 %v1619_v11, %v961_v59  ;;  %v964_v12 = vadd.f32 %v1440_v62, %v2067_v42  ;;  %v955_v63 = vpop.f32.mrb[43].mxu1 }
 0x218   :  { %v1087_v1 = vadd.f32 %v1620_v0, %v953_v61  ;;  %v956_v4 = vadd.f32 %v2067_v42, %v955_v63 }
 0x219   :  { %1153 = vst.msk [vmem:[%s2554_s5 + $0x150] sm:$0xff] %vm140_vm0, %v1089_v7  ;;  %v1090_v9 = vadd.f32 %v1621_v8, %v964_v12  ;;  %v1635_v7 = vld [vmem:[%s2550_s0 + $0x1d0] sm:$0xff] }
 0x21a   :  { %1151 = vst.msk [vmem:[%s2554_s5 + $0x140] sm:$0xff] %vm140_vm0, %v1087_v1  ;;  %v1088_v15 = vadd.f32 %v1622_v10, %v956_v4  ;;  %v1636_v1 = vld [vmem:[%s2550_s0 + $0x1c0] sm:$0xff] }
 0x21b   :  { %1154 = vst.msk [vmem:[%s2554_s5 + $0x158] sm:$0xff] %vm140_vm0, %v1090_v9  ;;  %v1637_v9 = vld [vmem:[%s2550_s0 + $0x1d8] sm:$0xff] }
 0x21c   :  { %1152 = vst.msk [vmem:[%s2554_s5 + $0x148] sm:$0xff] %vm140_vm0, %v1088_v15  ;;  %v1443_v16 = vpop.f32.mrb[44].mxu1  ;;  %v1638_v15 = vld [vmem:[%s2550_s0 + $0x1c8] sm:$0xff] }
 0x21d   :  { %v977_v17 = vadd.f32 %v1443_v16, %v2067_v42  ;;  %v968_v13 = vpop.f32.mrb[45].mxu1 }
 0x21e   :  { %v969_v18 = vadd.f32 %v2067_v42, %v968_v13  ;;  %v1444_v20 = vpop.f32.mrb[46].mxu1 }
 0x21f   :  { %v1093_v22 = vadd.f32 %v1623_v21, %v977_v17  ;;  %v980_v25 = vadd.f32 %v1444_v20, %v2067_v42  ;;  %v971_v14 = vpop.f32.mrb[47].mxu1 }
 0x220   :  { %v1091_v27 = vadd.f32 %v1624_v26, %v969_v18  ;;  %v972_v28 = vadd.f32 %v2067_v42, %v971_v14 }
 0x221   :  { %1157 = vst.msk [vmem:[%s2554_s5 + $0x170] sm:$0xff] %vm140_vm0, %v1093_v22  ;;  %v1094_v23 = vadd.f32 %v1625_v30, %v980_v25  ;;  %v1639_v22 = vld [vmem:[%s2550_s0 + $0x1f0] sm:$0xff] }
 0x222   :  { %1155 = vst.msk [vmem:[%s2554_s5 + $0x160] sm:$0xff] %vm140_vm0, %v1091_v27  ;;  %v1092_v19 = vadd.f32 %v1626_v31, %v972_v28  ;;  %v1640_v27 = vld [vmem:[%s2550_s0 + $0x1e0] sm:$0xff] }
 0x223   :  { %1158 = vst.msk [vmem:[%s2554_s5 + $0x178] sm:$0xff] %vm140_vm0, %v1094_v23  ;;  %v1641_v23 = vld [vmem:[%s2550_s0 + $0x1f8] sm:$0xff] }
 0x224   :  { %1156 = vst.msk [vmem:[%s2554_s5 + $0x168] sm:$0xff] %vm140_vm0, %v1092_v19  ;;  %v1447_v24 = vpop.f32.mrb[48].mxu1  ;;  %v1642_v19 = vld [vmem:[%s2550_s0 + $0x1e8] sm:$0xff] }
 0x225   :  { %v993_v32 = vadd.f32 %v1447_v24, %v2067_v42  ;;  %v984_v33 = vpop.f32.mrb[49].mxu1 }
 0x226   :  { %v985_v34 = vadd.f32 %v2067_v42, %v984_v33  ;;  %v1448_v35 = vpop.f32.mrb[50].mxu1 }
 0x227   :  { %v1097_v37 = vadd.f32 %v1627_v36, %v993_v32  ;;  %v996_v38 = vadd.f32 %v1448_v35, %v2067_v42  ;;  %v987_v39 = vpop.f32.mrb[51].mxu1 }
 0x228   :  { %v1095_v41 = vadd.f32 %v1628_v40, %v985_v34  ;;  %v988_v29 = vadd.f32 %v2067_v42, %v987_v39 }
 0x229   :  { %1161 = vst.msk [vmem:[%s2554_s5 + $0x190] sm:$0xff] %vm140_vm0, %v1097_v37  ;;  %v1098_v43 = vadd.f32 %v1629_v54, %v996_v38 }
 0x22a   :  { %1159 = vst.msk [vmem:[%s2554_s5 + $0x180] sm:$0xff] %vm140_vm0, %v1095_v41  ;;  %v1096_v45 = vadd.f32 %v1630_v44, %v988_v29 }
 0x22b   :  { %1162 = vst.msk [vmem:[%s2554_s5 + $0x198] sm:$0xff] %vm140_vm0, %v1098_v43 }
 0x22c   :  { %1160 = vst.msk [vmem:[%s2554_s5 + $0x188] sm:$0xff] %vm140_vm0, %v1096_v45  ;;  %v1451_v46 = vpop.f32.mrb[52].mxu1 }
 0x22d   :  { %v1009_v47 = vadd.f32 %v1451_v46, %v2067_v42  ;;  %v1000_v48 = vpop.f32.mrb[53].mxu1 }
 0x22e   :  { %v1001_v49 = vadd.f32 %v2067_v42, %v1000_v48  ;;  %v1452_v50 = vpop.f32.mrb[54].mxu1 }
 0x22f   :  { %v1101_v52 = vadd.f32 %v1631_v51, %v1009_v47  ;;  %v1012_v53 = vadd.f32 %v1452_v50, %v2067_v42  ;;  %v1003_v5 = vpop.f32.mrb[55].mxu1 }
 0x230   :  { %v1099_v6 = vadd.f32 %v1632_v2, %v1001_v49  ;;  %v1004_v55 = vadd.f32 %v2067_v42, %v1003_v5 }
 0x231   :  { %1165 = vst.msk [vmem:[%s2554_s5 + $0x1b0] sm:$0xff] %vm140_vm0, %v1101_v52  ;;  %v1102_v57 = vadd.f32 %v1633_v56, %v1012_v53 }
 0x232   :  { %1163 = vst.msk [vmem:[%s2554_s5 + $0x1a0] sm:$0xff] %vm140_vm0, %v1099_v6  ;;  %v1100_v3 = vadd.f32 %v1634_v58, %v1004_v55 }
 0x233   :  { %1166 = vst.msk [vmem:[%s2554_s5 + $0x1b8] sm:$0xff] %vm140_vm0, %v1102_v57 }
 0x234   :  { %1164 = vst.msk [vmem:[%s2554_s5 + $0x1a8] sm:$0xff] %vm140_vm0, %v1100_v3  ;;  %v1455_v59 = vpop.f32.mrb[56].mxu1 }
 0x235   :  { %v1025_v60 = vadd.f32 %v1455_v59, %v2067_v42  ;;  %v1016_v61 = vpop.f32.mrb[57].mxu1 }
 0x236   :  { %v1017_v62 = vadd.f32 %v2067_v42, %v1016_v61  ;;  %v1456_v11 = vpop.f32.mrb[58].mxu1 }
 0x237   :  { %v1105_v12 = vadd.f32 %v1635_v7, %v1025_v60  ;;  %v1028_v63 = vadd.f32 %v1456_v11, %v2067_v42  ;;  %v1019_v0 = vpop.f32.mrb[59].mxu1 }
 0x238   :  { %v1103_v4 = vadd.f32 %v1636_v1, %v1017_v62  ;;  %v1020_v8 = vadd.f32 %v2067_v42, %v1019_v0 }
 0x239   :  { %1169 = vst.msk [vmem:[%s2554_s5 + $0x1d0] sm:$0xff] %vm140_vm0, %v1105_v12  ;;  %v1106_v10 = vadd.f32 %v1637_v9, %v1028_v63 }
 0x23a   :  { %1167 = vst.msk [vmem:[%s2554_s5 + $0x1c0] sm:$0xff] %vm140_vm0, %v1103_v4  ;;  %v1104_v16 = vadd.f32 %v1638_v15, %v1020_v8 }
 0x23b   :  { %1170 = vst.msk [vmem:[%s2554_s5 + $0x1d8] sm:$0xff] %vm140_vm0, %v1106_v10 }
 0x23c   :  { %1168 = vst.msk [vmem:[%s2554_s5 + $0x1c8] sm:$0xff] %vm140_vm0, %v1104_v16  ;;  %v1459_v17 = vpop.f32.mrb[60].mxu1 }
 0x23d   :  { %v1041_v13 = vadd.f32 %v1459_v17, %v2067_v42  ;;  %v1032_v18 = vpop.f32.mrb[61].mxu1 }
 0x23e   :  { %v1033_v20 = vadd.f32 %v2067_v42, %v1032_v18  ;;  %v1460_v21 = vpop.f32.mrb[62].mxu1 }
 0x23f   :  { %v1109_v25 = vadd.f32 %v1639_v22, %v1041_v13  ;;  %v1044_v14 = vadd.f32 %v1460_v21, %v2067_v42  ;;  %v1035_v26 = vpop.f32.mrb[63].mxu1 }
 0x240   :  { %v1107_v28 = vadd.f32 %v1640_v27, %v1033_v20  ;;  %v1036_v30 = vadd.f32 %v2067_v42, %v1035_v26 }
 0x241   :  { %1173 = vst.msk [vmem:[%s2554_s5 + $0x1f0] sm:$0xff] %vm140_vm0, %v1109_v25  ;;  %v1110_v31 = vadd.f32 %v1641_v23, %v1044_v14 }
 0x242   :  { %1171 = vst.msk [vmem:[%s2554_s5 + $0x1e0] sm:$0xff] %vm140_vm0, %v1107_v28  ;;  %v1108_v42 = vadd.f32 %v1642_v19, %v1036_v30 }
 0x243   :  { %1174 = vst.msk [vmem:[%s2554_s5 + $0x1f8] sm:$0xff] %vm140_vm0, %v1110_v31 }
 0x244   :  { %1172 = vst.msk [vmem:[%s2554_s5 + $0x1e8] sm:$0xff] %vm140_vm0, %v1108_v42 }

</bundles_post_ra>
